<compile_context>
chip_gen: v5e
topology: v5e:2x2
jax: 0.10.0
libtpu: 0.0.40
codegen_flags: <defaults>
</compile_context>

<pallas_src>
import functools

import jax
import jax.numpy as jnp
from jax.experimental import pallas as pl
from jax.experimental.pallas import tpu as pltpu


def dense_half_down_dims(input_dim: int, output_dim: int):
    """Replicates the layer-width logic of DenseHalfDownLayer.__init__."""
    output_dim = int(output_dim)
    if output_dim > 256:
        return [(input_dim, output_dim)]
    dims = [(input_dim, 256)]
    dim = 256
    while dim // 2 > output_dim:
        dims.append((dim, dim // 2))
        dim = dim // 2
        if dim <= 16:
            break
    dims.append((dim, output_dim))
    return dims


def _round_up(x: int, m: int) -> int:
    return ((x + m - 1) // m) * m


def _make_kernel(n_layers: int):
    def kernel(*refs):
        # refs = (x_ref, w0, b0, w1, b1, ..., w_{L-1}, b_{L-1}, o_ref)
        x_ref = refs[0]
        o_ref = refs[-1]
        param_refs = refs[1:-1]

        h = x_ref[...].astype(jnp.float32)
        for i in range(n_layers):
            w = param_refs[2 * i][...]          # bf16, lane-padded
            b = param_refs[2 * i + 1][...]      # f32,  lane-padded
            # bf16 x bf16 -> f32 accumulation on the MXU.
            h = jnp.dot(h.astype(jnp.bfloat16), w,
                        preferred_element_type=jnp.float32) + b
            if i < n_layers - 1:
                h = jnp.tanh(h)                 # inner_activator = Tanh
            else:
                h = jax.nn.sigmoid(h)           # final_activator = Sigmoid
        o_ref[...] = h.astype(o_ref.dtype)

    return kernel


@functools.partial(jax.jit, static_argnames=("tile_b",))
def dense_half_down_forward(x, params, *, tile_b=512):
    """x: (B, input_dim) float32. params: list of (W, b), W: (in, out), b: (1, out)."""
    B, input_dim = x.shape
    n_layers = len(params)
    out_dim = params[-1][0].shape[1]

    # ---- lane-pad every layer width up to a multiple of 128, pre-cast W to bf16 ----
    padded = []
    prev_out = input_dim                       # x's feature dim stays unpadded
    for (w, b) in params:
        din, dout = w.shape
        dout_p = _round_up(dout, 128)
        w_p = jnp.zeros((prev_out, dout_p), jnp.float32).at[:din, :dout].set(w)
        b_p = jnp.zeros((1, dout_p), jnp.float32).at[:, :dout].set(b)
        padded.append((w_p.astype(jnp.bfloat16), b_p))
        prev_out = dout_p
    out_dim_p = prev_out

    # ---- batch tile selection: multiple of 8, >=2 grid steps when possible ----
    tile = max(8, min(int(tile_b), _round_up(B, 8)))
    if B > 8 and pl.cdiv(B, tile) < 2:
        tile = max(8, _round_up(pl.cdiv(B, 2), 8))
    grid_b = pl.cdiv(B, tile)
    B_pad = grid_b * tile
    if B_pad != B:
        x = jnp.pad(x, ((0, B_pad - B), (0, 0)))

    in_specs = [pl.BlockSpec((tile, input_dim), lambda i: (i, 0))]
    flat_params = []
    for (w, b) in padded:
        in_specs.append(pl.BlockSpec(w.shape, lambda i: (0, 0)))
        in_specs.append(pl.BlockSpec(b.shape, lambda i: (0, 0)))
        flat_params.extend([w, b])

    out_spec = pl.BlockSpec((tile, out_dim_p), lambda i: (i, 0))

    y_pad = pl.pallas_call(
        _make_kernel(n_layers),
        out_shape=jax.ShapeDtypeStruct((B_pad, out_dim_p), x.dtype),
        grid_spec=pltpu.PrefetchScalarGridSpec(
            num_scalar_prefetch=0,
            grid=(grid_b,),
            in_specs=in_specs,
            out_specs=out_spec,
        ),
        compiler_params=pltpu.CompilerParams(
            dimension_semantics=("parallel",),
        ),
    )(x, *flat_params)

    # Slice away batch padding and lane padding outside the kernel.
    return y_pad[:B, :out_dim]


def init_params(key, layer_dims):
    """Deterministic synthetic init (not a checkpoint load)."""
    params = []
    for li, (din, dout) in enumerate(layer_dims):
        kw, kb = jax.random.split(jax.random.fold_in(key, li))
        scale = 1.0 / jnp.sqrt(jnp.float32(din))
        w = (jax.random.uniform(kw, (din, dout), jnp.float32) * 2.0 - 1.0) * scale
        b = (jax.random.uniform(kb, (1, dout), jnp.float32) * 2.0 - 1.0) * scale
        params.append((w, b))
    return params


def reference_forward(x, params):
    h = x
    n = len(params)
    for i, (w, b) in enumerate(params):
        h = h @ w + b
        h = jnp.tanh(h) if i < n - 1 else jax.nn.sigmoid(h)
    return h


if __name__ == "__main__":
    # Small shapes consistent with the module: input_dim=32, output_dim=8.
    # Layer widths become 32 -> 256 -> 128 -> 64 -> 32 -> 16 -> 8.
    input_dim, output_dim = 32, 8
    batch = 16

    key = jax.random.PRNGKey(0)
    kx, kp = jax.random.split(key)

    layer_dims = dense_half_down_dims(input_dim, output_dim)
    params = init_params(kp, layer_dims)
    x = jax.random.normal(kx, (batch, input_dim), jnp.float32)

    y = dense_half_down_forward(x, params)
    y = jax.block_until_ready(y)

    y_ref = reference_forward(x, params)
    assert y.shape == (batch, output_dim)
    # bf16 matmul inputs (f32 accumulation): relaxed tolerance vs the f32 reference.
    assert jnp.allclose(y, y_ref, atol=3e-2, rtol=3e-2), "mismatch vs JAX reference"

    print("KERNEL_OK")
</pallas_src>

<mosaic_0001>
module attributes {stable_mosaic.version = 11 : i64} {
  func.func @kernel(%arg0: i32, %arg1: memref<8x32xf32, #tpu.memory_space<vmem>>, %arg2: memref<32x256xbf16, #tpu.memory_space<vmem>>, %arg3: memref<1x256xf32, #tpu.memory_space<vmem>>, %arg4: memref<256x128xbf16, #tpu.memory_space<vmem>>, %arg5: memref<1x128xf32, #tpu.memory_space<vmem>>, %arg6: memref<128x128xbf16, #tpu.memory_space<vmem>>, %arg7: memref<1x128xf32, #tpu.memory_space<vmem>>, %arg8: memref<128x128xbf16, #tpu.memory_space<vmem>>, %arg9: memref<1x128xf32, #tpu.memory_space<vmem>>, %arg10: memref<128x128xbf16, #tpu.memory_space<vmem>>, %arg11: memref<1x128xf32, #tpu.memory_space<vmem>>, %arg12: memref<128x128xbf16, #tpu.memory_space<vmem>>, %arg13: memref<1x128xf32, #tpu.memory_space<vmem>>, %arg14: memref<8x128xf32, #tpu.memory_space<vmem>>) attributes {dimension_semantics = [#tpu.dimension_semantics<parallel>], iteration_bounds = array<i64: 2>, scalar_prefetch = 0 : i64, scratch_operands = 0 : i64, tpu.core_type = #tpu.core_type<tc>, window_params = [{transform_indices = @transform_0, window_bounds = array<i64: 8, 32>}, {pipeline_mode = #tpu.pipeline_mode<synchronous>, transform_indices = @transform_1, window_bounds = array<i64: 32, 256>}, {pipeline_mode = #tpu.pipeline_mode<synchronous>, transform_indices = @transform_2, window_bounds = array<i64: 1, 256>}, {pipeline_mode = #tpu.pipeline_mode<synchronous>, transform_indices = @transform_3, window_bounds = array<i64: 256, 128>}, {pipeline_mode = #tpu.pipeline_mode<synchronous>, transform_indices = @transform_4, window_bounds = array<i64: 1, 128>}, {pipeline_mode = #tpu.pipeline_mode<synchronous>, transform_indices = @transform_5, window_bounds = array<i64: 128, 128>}, {pipeline_mode = #tpu.pipeline_mode<synchronous>, transform_indices = @transform_6, window_bounds = array<i64: 1, 128>}, {pipeline_mode = #tpu.pipeline_mode<synchronous>, transform_indices = @transform_7, window_bounds = array<i64: 128, 128>}, {pipeline_mode = #tpu.pipeline_mode<synchronous>, transform_indices = @transform_8, window_bounds = array<i64: 1, 128>}, {pipeline_mode = #tpu.pipeline_mode<synchronous>, transform_indices = @transform_9, window_bounds = array<i64: 128, 128>}, {pipeline_mode = #tpu.pipeline_mode<synchronous>, transform_indices = @transform_10, window_bounds = array<i64: 1, 128>}, {pipeline_mode = #tpu.pipeline_mode<synchronous>, transform_indices = @transform_11, window_bounds = array<i64: 128, 128>}, {pipeline_mode = #tpu.pipeline_mode<synchronous>, transform_indices = @transform_12, window_bounds = array<i64: 1, 128>}, {transform_indices = @transform_13, window_bounds = array<i64: 8, 128>}]} {
    %c0 = arith.constant 0 : index
    %c0_0 = arith.constant 0 : index
    %0 = vector.load %arg1[%c0, %c0_0] : memref<8x32xf32, #tpu.memory_space<vmem>>, vector<8x32xf32>
    %c0_1 = arith.constant 0 : index
    %c0_2 = arith.constant 0 : index
    %1 = vector.load %arg2[%c0_1, %c0_2] : memref<32x256xbf16, #tpu.memory_space<vmem>>, vector<32x256xbf16>
    %c0_3 = arith.constant 0 : index
    %c0_4 = arith.constant 0 : index
    %2 = vector.load %arg3[%c0_3, %c0_4] : memref<1x256xf32, #tpu.memory_space<vmem>>, vector<1x256xf32>
    %3 = arith.truncf %0 : vector<8x32xf32> to vector<8x32xbf16>
    %cst = arith.constant dense<0.000000e+00> : vector<8x256xf32>
    %4 = tpu.matmul %3, %1, %cst {dimension_numbers = #tpu.dot_dimension_numbers<[1], [0], [0], [1], [0, 0, 1, 1], [], []>} : vector<8x32xbf16>, vector<32x256xbf16>, vector<8x256xf32> -> vector<8x256xf32>
    %5 = vector.broadcast %2 : vector<1x256xf32> to vector<8x256xf32>
    %6 = arith.addf %4, %5 : vector<8x256xf32>
    %7 = math.tanh %6 : vector<8x256xf32>
    %c0_5 = arith.constant 0 : index
    %c0_6 = arith.constant 0 : index
    %8 = vector.load %arg4[%c0_5, %c0_6] : memref<256x128xbf16, #tpu.memory_space<vmem>>, vector<256x128xbf16>
    %c0_7 = arith.constant 0 : index
    %c0_8 = arith.constant 0 : index
    %9 = vector.load %arg5[%c0_7, %c0_8] : memref<1x128xf32, #tpu.memory_space<vmem>>, vector<1x128xf32>
    %10 = arith.truncf %7 : vector<8x256xf32> to vector<8x256xbf16>
    %cst_9 = arith.constant dense<0.000000e+00> : vector<8x128xf32>
    %11 = tpu.matmul %10, %8, %cst_9 {dimension_numbers = #tpu.dot_dimension_numbers<[1], [0], [0], [1], [0, 0, 1, 1], [], []>} : vector<8x256xbf16>, vector<256x128xbf16>, vector<8x128xf32> -> vector<8x128xf32>
    %12 = vector.broadcast %9 : vector<1x128xf32> to vector<8x128xf32>
    %13 = arith.addf %11, %12 : vector<8x128xf32>
    %14 = math.tanh %13 : vector<8x128xf32>
    %c0_10 = arith.constant 0 : index
    %c0_11 = arith.constant 0 : index
    %15 = vector.load %arg6[%c0_10, %c0_11] : memref<128x128xbf16, #tpu.memory_space<vmem>>, vector<128x128xbf16>
    %c0_12 = arith.constant 0 : index
    %c0_13 = arith.constant 0 : index
    %16 = vector.load %arg7[%c0_12, %c0_13] : memref<1x128xf32, #tpu.memory_space<vmem>>, vector<1x128xf32>
    %17 = arith.truncf %14 : vector<8x128xf32> to vector<8x128xbf16>
    %cst_14 = arith.constant dense<0.000000e+00> : vector<8x128xf32>
    %18 = tpu.matmul %17, %15, %cst_14 {dimension_numbers = #tpu.dot_dimension_numbers<[1], [0], [0], [1], [0, 0, 1, 1], [], []>} : vector<8x128xbf16>, vector<128x128xbf16>, vector<8x128xf32> -> vector<8x128xf32>
    %19 = vector.broadcast %16 : vector<1x128xf32> to vector<8x128xf32>
    %20 = arith.addf %18, %19 : vector<8x128xf32>
    %21 = math.tanh %20 : vector<8x128xf32>
    %c0_15 = arith.constant 0 : index
    %c0_16 = arith.constant 0 : index
    %22 = vector.load %arg8[%c0_15, %c0_16] : memref<128x128xbf16, #tpu.memory_space<vmem>>, vector<128x128xbf16>
    %c0_17 = arith.constant 0 : index
    %c0_18 = arith.constant 0 : index
    %23 = vector.load %arg9[%c0_17, %c0_18] : memref<1x128xf32, #tpu.memory_space<vmem>>, vector<1x128xf32>
    %24 = arith.truncf %21 : vector<8x128xf32> to vector<8x128xbf16>
    %cst_19 = arith.constant dense<0.000000e+00> : vector<8x128xf32>
    %25 = tpu.matmul %24, %22, %cst_19 {dimension_numbers = #tpu.dot_dimension_numbers<[1], [0], [0], [1], [0, 0, 1, 1], [], []>} : vector<8x128xbf16>, vector<128x128xbf16>, vector<8x128xf32> -> vector<8x128xf32>
    %26 = vector.broadcast %23 : vector<1x128xf32> to vector<8x128xf32>
    %27 = arith.addf %25, %26 : vector<8x128xf32>
    %28 = math.tanh %27 : vector<8x128xf32>
    %c0_20 = arith.constant 0 : index
    %c0_21 = arith.constant 0 : index
    %29 = vector.load %arg10[%c0_20, %c0_21] : memref<128x128xbf16, #tpu.memory_space<vmem>>, vector<128x128xbf16>
    %c0_22 = arith.constant 0 : index
    %c0_23 = arith.constant 0 : index
    %30 = vector.load %arg11[%c0_22, %c0_23] : memref<1x128xf32, #tpu.memory_space<vmem>>, vector<1x128xf32>
    %31 = arith.truncf %28 : vector<8x128xf32> to vector<8x128xbf16>
    %cst_24 = arith.constant dense<0.000000e+00> : vector<8x128xf32>
    %32 = tpu.matmul %31, %29, %cst_24 {dimension_numbers = #tpu.dot_dimension_numbers<[1], [0], [0], [1], [0, 0, 1, 1], [], []>} : vector<8x128xbf16>, vector<128x128xbf16>, vector<8x128xf32> -> vector<8x128xf32>
    %33 = vector.broadcast %30 : vector<1x128xf32> to vector<8x128xf32>
    %34 = arith.addf %32, %33 : vector<8x128xf32>
    %35 = math.tanh %34 : vector<8x128xf32>
    %c0_25 = arith.constant 0 : index
    %c0_26 = arith.constant 0 : index
    %36 = vector.load %arg12[%c0_25, %c0_26] : memref<128x128xbf16, #tpu.memory_space<vmem>>, vector<128x128xbf16>
    %c0_27 = arith.constant 0 : index
    %c0_28 = arith.constant 0 : index
    %37 = vector.load %arg13[%c0_27, %c0_28] : memref<1x128xf32, #tpu.memory_space<vmem>>, vector<1x128xf32>
    %38 = arith.truncf %35 : vector<8x128xf32> to vector<8x128xbf16>
    %cst_29 = arith.constant dense<0.000000e+00> : vector<8x128xf32>
    %39 = tpu.matmul %38, %36, %cst_29 {dimension_numbers = #tpu.dot_dimension_numbers<[1], [0], [0], [1], [0, 0, 1, 1], [], []>} : vector<8x128xbf16>, vector<128x128xbf16>, vector<8x128xf32> -> vector<8x128xf32>
    %40 = vector.broadcast %37 : vector<1x128xf32> to vector<8x128xf32>
    %41 = arith.addf %39, %40 : vector<8x128xf32>
    %42 = arith.negf %41 : vector<8x128xf32>
    %43 = math.exp %42 : vector<8x128xf32>
    %cst_30 = arith.constant 1.000000e+00 : f32
    %44 = vector.broadcast %cst_30 : f32 to vector<8x128xf32>
    %45 = arith.addf %44, %43 : vector<8x128xf32>
    %46 = arith.divf %44, %45 : vector<8x128xf32>
    %c0_31 = arith.constant 0 : index
    %c0_32 = arith.constant 0 : index
    %47 = vector.load %arg14[%c0_31, %c0_32] : memref<8x128xf32, #tpu.memory_space<vmem>>, vector<8x128xf32>
    tpu.vector_store %arg14[%c0_31, %c0_32], %46 {strides = array<i32>} : memref<8x128xf32, #tpu.memory_space<vmem>>, vector<8x128xf32>,
    return
  }
  func.func @transform_0(%arg0: i32) -> (i32, i32) {
    %c0_i32 = arith.constant 0 : i32
    %c0_i32_0 = arith.constant 0 : i32
    return %arg0, %c0_i32 : i32, i32
  }
  func.func @transform_1(%arg0: i32) -> (i32, i32) {
    %c0_i32 = arith.constant 0 : i32
    %c0_i32_0 = arith.constant 0 : i32
    %c0_i32_1 = arith.constant 0 : i32
    return %c0_i32, %c0_i32_0 : i32, i32
  }
  func.func @transform_2(%arg0: i32) -> (i32, i32) {
    %c0_i32 = arith.constant 0 : i32
    %c0_i32_0 = arith.constant 0 : i32
    %c0_i32_1 = arith.constant 0 : i32
    return %c0_i32, %c0_i32_0 : i32, i32
  }
  func.func @transform_3(%arg0: i32) -> (i32, i32) {
    %c0_i32 = arith.constant 0 : i32
    %c0_i32_0 = arith.constant 0 : i32
    %c0_i32_1 = arith.constant 0 : i32
    return %c0_i32, %c0_i32_0 : i32, i32
  }
  func.func @transform_4(%arg0: i32) -> (i32, i32) {
    %c0_i32 = arith.constant 0 : i32
    %c0_i32_0 = arith.constant 0 : i32
    %c0_i32_1 = arith.constant 0 : i32
    return %c0_i32, %c0_i32_0 : i32, i32
  }
  func.func @transform_5(%arg0: i32) -> (i32, i32) {
    %c0_i32 = arith.constant 0 : i32
    %c0_i32_0 = arith.constant 0 : i32
    %c0_i32_1 = arith.constant 0 : i32
    return %c0_i32, %c0_i32_0 : i32, i32
  }
  func.func @transform_6(%arg0: i32) -> (i32, i32) {
    %c0_i32 = arith.constant 0 : i32
    %c0_i32_0 = arith.constant 0 : i32
    %c0_i32_1 = arith.constant 0 : i32
    return %c0_i32, %c0_i32_0 : i32, i32
  }
  func.func @transform_7(%arg0: i32) -> (i32, i32) {
    %c0_i32 = arith.constant 0 : i32
    %c0_i32_0 = arith.constant 0 : i32
    %c0_i32_1 = arith.constant 0 : i32
    return %c0_i32, %c0_i32_0 : i32, i32
  }
  func.func @transform_8(%arg0: i32) -> (i32, i32) {
    %c0_i32 = arith.constant 0 : i32
    %c0_i32_0 = arith.constant 0 : i32
    %c0_i32_1 = arith.constant 0 : i32
    return %c0_i32, %c0_i32_0 : i32, i32
  }
  func.func @transform_9(%arg0: i32) -> (i32, i32) {
    %c0_i32 = arith.constant 0 : i32
    %c0_i32_0 = arith.constant 0 : i32
    %c0_i32_1 = arith.constant 0 : i32
    return %c0_i32, %c0_i32_0 : i32, i32
  }
  func.func @transform_10(%arg0: i32) -> (i32, i32) {
    %c0_i32 = arith.constant 0 : i32
    %c0_i32_0 = arith.constant 0 : i32
    %c0_i32_1 = arith.constant 0 : i32
    return %c0_i32, %c0_i32_0 : i32, i32
  }
  func.func @transform_11(%arg0: i32) -> (i32, i32) {
    %c0_i32 = arith.constant 0 : i32
    %c0_i32_0 = arith.constant 0 : i32
    %c0_i32_1 = arith.constant 0 : i32
    return %c0_i32, %c0_i32_0 : i32, i32
  }
  func.func @transform_12(%arg0: i32) -> (i32, i32) {
    %c0_i32 = arith.constant 0 : i32
    %c0_i32_0 = arith.constant 0 : i32
    %c0_i32_1 = arith.constant 0 : i32
    return %c0_i32, %c0_i32_0 : i32, i32
  }
  func.func @transform_13(%arg0: i32) -> (i32, i32) {
    %c0_i32 = arith.constant 0 : i32
    %c0_i32_0 = arith.constant 0 : i32
    return %arg0, %c0_i32 : i32, i32
  }
}

</mosaic_0001>

<bundles_post_ra>
// kernel: dense_half_down_forward.1
= control target key start
LH: loop header
LB: loop body
LE: loop exit
PB: predicated region body
PF: predicated region fallthrough
CT: control target
= control target key end

     0   :  { %s1445_s25 = smov 0   ;;  %s1655_s0 = inlined_call_operand.vmem [shape: f32[16,32], index: 0, kind: input, shape index: {}]   ;;  %s1656_s1 = inlined_call_operand.vmem [shape: bf16[32,256], index: 1, kind: input, shape index: {}]   ;;  %s1657_s2 = inlined_call_operand.vmem [shape: f32[1,256], index: 2, kind: input, shape index: {}]   ;;  %s1658_s3 = inlined_call_operand.vmem [shape: bf16[256,128], index: 3, kind: input, shape index: {}]   ;;  %s1659_s4 = inlined_call_operand.vmem [shape: f32[1,128], index: 4, kind: input, shape index: {}]   ;;  %s1660_s5 = inlined_call_operand.vmem [shape: bf16[128,128], index: 5, kind: input, shape index: {}]   ;;  %s1661_s6 = inlined_call_operand.vmem [shape: f32[1,128], index: 6, kind: input, shape index: {}]   ;;  %s1662_s7 = inlined_call_operand.vmem [shape: bf16[128,128], index: 7, kind: input, shape index: {}]   ;;  %s1663_s8 = inlined_call_operand.vmem [shape: f32[1,128], index: 8, kind: input, shape index: {}]   ;;  %s1664_s9 = inlined_call_operand.vmem [shape: bf16[128,128], index: 9, kind: input, shape index: {}]   ;;  %s1665_s10 = inlined_call_operand.vmem [shape: f32[1,128], index: 10, kind: input, shape index: {}]   ;;  %s1666_s11 = inlined_call_operand.vmem [shape: bf16[128,128], index: 11, kind: input, shape index: {}]   ;;  %s1667_s12 = inlined_call_operand.vmem [shape: f32[1,128], index: 12, kind: input, shape index: {}]   ;;  %s1668_s13 = inlined_call_operand.vmem [shape: f32[16,128], index: 13, kind: output, shape index: {}]  }
   0x1 LB: > { %s1066_s26 = sadd.s32 4294967295, %s1373_s25   ;;  %p1070_p0 = scmp.ge.s32.totalorder %s1373_s25, 1  ;;  %s1373_s25 = sphi %s1445_s25, %s23_s25  }
   0x2   : > { %p386_p1 = scmp.lt.s32.totalorder %s1373_s25, 3 }
   0x4   : > { %p387_p2 = pnand %p1070_p0, %p386_p1 }
   0x5   : > { %p428_p3 = scmp.lt.s32.totalorder (!%p387_p2), %s1066_s26, 1 }
   0x6   : > { %390 = sbr.rel (%p387_p2) target bundleno = 883 (0x373), region = 72 }
   0xb   : > { %v1083_v0 = vld [vmem:[%s1656_s1 + $0x10] sm:$0xf]  ;;  %v1289_v1 = vld [vmem:[%s1656_s1 + $0x14] sm:$0xf0]  ;;  %v1288_v2 = vld [vmem:[%s1656_s1 + $0x14] sm:$0xf] }
   0xc   : > { %v1084_v3 = vor.u32 %v1289_v1, %v1083_v0  ;;  %v1085_v4 = vld [vmem:[%s1656_s1 + $0x18] sm:$0xf0]  ;;  %v1075_v5 = vld [vmem:[%s1656_s1] sm:$0xf]  ;;  %v1287_v6 = vld [vmem:[%s1656_s1 + $0x4] sm:$0xf0] }
   0xd   : > { %v1088_v7 = vor.u32 %v1288_v2, %v1085_v4  ;;  %v1286_v8 = vld [vmem:[%s1656_s1 + $0x4] sm:$0xf]  ;;  %v1077_v9 = vld [vmem:[%s1656_s1 + $0x8] sm:$0xf0]  ;;  %v1076_v10 = vor.u32 %v1287_v6, %v1075_v5  ;;  %v1297_v11 = vld [vmem:[%s1658_s3 + $0x38] sm:$0xff]  ;;  %s1670_s26 = smov (!%p428_p3, %s1066_s26), 1 }
   0xe   : > { %479 = vmatpush.bf16.msra.mxu0 %v1084_v3  ;;  %v1305_v12 = vld [vmem:[%s1658_s3 + $0x78] sm:$0xff]  ;;  %v1080_v13 = vor.u32 %v1286_v8, %v1077_v9  ;;  %635 = vmatpush.bf16.msra.mxu2 %v1297_v11  ;;  %v1296_v14 = vld [vmem:[%s1658_s3 + $0x30] sm:$0xff]  ;;  %s1071_s19 = sshll.u32 %s1670_s26, 3  ;;  %vm469_vm0 = vcmask 261120   ;;  %v1295_v18 = vld [vmem:[%s1658_s3 + $0x28] sm:$0xff] }
   0xf   : > { %492 = vmatpush.bf16.msra.mxu1 %v1088_v7  ;;  %648 = vmatpush.bf16.msra.mxu3 %v1305_v12  ;;  %v1304_v15 = vld [vmem:[%s1658_s3 + $0x70] sm:$0xff]  ;;  %s431_s22 = scalar_lea.vmem %s1655_s0, %s1071_s19  ;;  %v1303_v19 = vld [vmem:[%s1658_s3 + $0x68] sm:$0xff]  ;;  %v1294_v20 = vld [vmem:[%s1658_s3 + $0x20] sm:$0xff]  ;;  %s435_s29 = scalar_lea.vmem %s1668_s13, %s1071_s19 }
  0x10   : > { %v437_v16 = vld [vmem:[%s431_s22] sm:$0xff]  ;;  %v1293_v22 = vld [vmem:[%s1658_s3 + $0x18] sm:$0xff]  ;;  %v1292_v24 = vld [vmem:[%s1658_s3 + $0x10] sm:$0xff] }
  0x11   : > { %v443_v17 = vpack.c.bf16 %v437_v16, %v437_v16  ;;  %v1302_v21 = vld [vmem:[%s1658_s3 + $0x60] sm:$0xff]  ;;  %v1301_v23 = vld [vmem:[%s1658_s3 + $0x58] sm:$0xff]  ;;  %v1300_v25 = vld [vmem:[%s1658_s3 + $0x50] sm:$0xff] }
  0x12   : > { %480 = vmatpush.bf16.msra.mxu0 %v1076_v10  ;;  %636 = vmatpush.bf16.msra.mxu2 %v1296_v14  ;;  %v1291_v26 = vld [vmem:[%s1658_s3 + $0x8] sm:$0xff]  ;;  %v1290_v28 = vld [vmem:[%s1658_s3] sm:$0xff]  ;;  %v1313_v30 = vld [vmem:[%s1660_s5 + $0x38] sm:$0xff] }
  0x13   : > { %493 = vmatpush.bf16.msra.mxu1 %v1080_v13  ;;  %649 = vmatpush.bf16.msra.mxu3 %v1304_v15  ;;  %v1299_v27 = vld [vmem:[%s1658_s3 + $0x48] sm:$0xff]  ;;  %v1298_v29 = vld [vmem:[%s1658_s3 + $0x40] sm:$0xff]  ;;  %v1312_v31 = vld [vmem:[%s1660_s5 + $0x30] sm:$0xff] }
  0x14   : > { %v1311_v32 = vld [vmem:[%s1660_s5 + $0x28] sm:$0xff]  ;;  %v1310_v33 = vld [vmem:[%s1660_s5 + $0x20] sm:$0xff]  ;;  %v1309_v35 = vld [vmem:[%s1660_s5 + $0x18] sm:$0xff] }
  0x15   : > { %1089 = vmatmul.msk.bf16.vlgmr.msra.gmra.mxu0 %vm469_vm0, %v443_v17  ;;  %v442_v34 = vld [vmem:[%s1657_s2] sm:$0x3]  ;;  %v1308_v48 = vld [vmem:[%s1660_s5 + $0x10] sm:$0xff]  ;;  %v1307_v49 = vld [vmem:[%s1660_s5 + $0x8] sm:$0xff] }
  0x16   : > { %1090 = vmatmul.msk.bf16.vlgmr.msra.gmra.mxu1 %vm469_vm0, %v443_v17  ;;  %637 = vmatpush.bf16.msra.mxu2 %v1295_v18  ;;  %v445_v36 = vperm.slane %v442_v34, 0  ;;  %v446_v37 = vperm.slane %v442_v34, 1  ;;  %v1306_v50 = vld [vmem:[%s1660_s5] sm:$0xff]  ;;  %v1321_v51 = vld [vmem:[%s1662_s7 + $0x38] sm:$0xff]  ;;  %v1320_v52 = vld [vmem:[%s1662_s7 + $0x30] sm:$0xff] }
  0x17   : > { %650 = vmatpush.bf16.msra.mxu3 %v1303_v19  ;;  %731 = vmatpush.bf16.msrb.mxu0 %v1313_v30  ;;  %v1319_v53 = vld [vmem:[%s1662_s7 + $0x28] sm:$0xff]  ;;  %v1318_v54 = vld [vmem:[%s1662_s7 + $0x20] sm:$0xff]  ;;  %v1317_v55 = vld [vmem:[%s1662_s7 + $0x18] sm:$0xff] }
  0x18   : > { %814 = vmatpush.bf16.msrb.mxu1 %v1321_v51  ;;  %v1346_v56 = vld [vmem:[%s1659_s4] ss:$0 sm:$0xff]  ;;  %v1316_v1 = vld [vmem:[%s1662_s7 + $0x10] sm:$0xff]  ;;  %v1315_v2 = vld [vmem:[%s1662_s7 + $0x8] sm:$0xff] }
  0x19   : > { %v1314_v3 = vld [vmem:[%s1662_s7] sm:$0xff]  ;;  %v1329_v4 = vld [vmem:[%s1664_s9 + $0x38] sm:$0xff]  ;;  %v1328_v5 = vld [vmem:[%s1664_s9 + $0x30] sm:$0xff] }
  0x1a   : > { %638 = vmatpush.bf16.msra.mxu2 %v1294_v20  ;;  %v1327_v6 = vld [vmem:[%s1664_s9 + $0x28] sm:$0xff]  ;;  %v1326_v7 = vld [vmem:[%s1664_s9 + $0x20] sm:$0xff]  ;;  %v1325_v8 = vld [vmem:[%s1664_s9 + $0x18] sm:$0xff] }
  0x1b   : > { %651 = vmatpush.bf16.msra.mxu3 %v1302_v21  ;;  %732 = vmatpush.bf16.msrb.mxu0 %v1312_v31  ;;  %v1347_v9 = vld [vmem:[%s1661_s6] ss:$0 sm:$0xff]  ;;  %v1324_v15 = vld [vmem:[%s1664_s9 + $0x10] sm:$0xff]  ;;  %v1323_v16 = vld [vmem:[%s1664_s9 + $0x8] sm:$0xff] }
  0x1c   : > { %815 = vmatpush.bf16.msrb.mxu1 %v1320_v52  ;;  %v1322_v17 = vld [vmem:[%s1664_s9] sm:$0xff]  ;;  %v1337_v18 = vld [vmem:[%s1666_s11 + $0x38] sm:$0xff]  ;;  %v1336_v19 = vld [vmem:[%s1666_s11 + $0x30] sm:$0xff] }
  0x1d   : > { %v1335_v20 = vld [vmem:[%s1666_s11 + $0x28] sm:$0xff]  ;;  %v1334_v21 = vld [vmem:[%s1666_s11 + $0x20] sm:$0xff] }
  0x1e   : > { %639 = vmatpush.bf16.msra.mxu2 %v1293_v22  ;;  %v1333_v22 = vld [vmem:[%s1666_s11 + $0x18] sm:$0xff]  ;;  %v1331_v30 = vld [vmem:[%s1666_s11 + $0x8] sm:$0xff]  ;;  %v1330_v31 = vld [vmem:[%s1666_s11] sm:$0xff] }
  0x1f   : > { %652 = vmatpush.bf16.msra.mxu3 %v1301_v23  ;;  %733 = vmatpush.bf16.msrb.mxu0 %v1311_v32  ;;  %v1348_v23 = vld [vmem:[%s1663_s8] ss:$0 sm:$0xff] }
  0x20   : > { %816 = vmatpush.bf16.msrb.mxu1 %v1319_v53  ;;  %v1349_v32 = vld [vmem:[%s1665_s10] ss:$0 sm:$0xff] }
  0x22   : > { %640 = vmatpush.bf16.msra.mxu2 %v1292_v24 }
  0x23   : > { %653 = vmatpush.bf16.msra.mxu3 %v1300_v25  ;;  %734 = vmatpush.bf16.msrb.mxu0 %v1310_v33 }
  0x24   : > { %817 = vmatpush.bf16.msrb.mxu1 %v1318_v54 }
  0x26   : > { %641 = vmatpush.bf16.msra.mxu2 %v1291_v26 }
  0x27   : > { %654 = vmatpush.bf16.msra.mxu3 %v1299_v27  ;;  %735 = vmatpush.bf16.msrb.mxu0 %v1309_v35 }
  0x28   : > { %818 = vmatpush.bf16.msrb.mxu1 %v1317_v55 }
  0x2a   : > { %642 = vmatpush.bf16.msra.mxu2 %v1290_v28 }
  0x2b   : > { %655 = vmatpush.bf16.msra.mxu3 %v1298_v29  ;;  %736 = vmatpush.bf16.msrb.mxu0 %v1308_v48  ;;  %v1332_v29 = vld [vmem:[%s1666_s11 + $0x10] sm:$0xff] }
  0x2c   : > { %819 = vmatpush.bf16.msrb.mxu1 %v1316_v1 }
  0x2e   : > { %897 = vmatpush.bf16.msrb.mxu2 %v1329_v4 }
  0x2f   : > { %737 = vmatpush.bf16.msrb.mxu0 %v1307_v49  ;;  %980 = vmatpush.bf16.msrb.mxu3 %v1337_v18 }
  0x30   : > { %820 = vmatpush.bf16.msrb.mxu1 %v1315_v2 }
  0x32   : > { %898 = vmatpush.bf16.msrb.mxu2 %v1328_v5 }
  0x33   : > { %738 = vmatpush.bf16.msrb.mxu0 %v1306_v50  ;;  %981 = vmatpush.bf16.msrb.mxu3 %v1336_v19 }
  0x34   : > { %821 = vmatpush.bf16.msrb.mxu1 %v1314_v3 }
  0x36   : > { %899 = vmatpush.bf16.msrb.mxu2 %v1327_v6 }
  0x37   : > { %982 = vmatpush.bf16.msrb.mxu3 %v1335_v20 }
  0x3a   : > { %900 = vmatpush.bf16.msrb.mxu2 %v1326_v7 }
  0x3b   : > { %983 = vmatpush.bf16.msrb.mxu3 %v1334_v21 }
  0x3e   : > { %901 = vmatpush.bf16.msrb.mxu2 %v1325_v8 }
  0x3f   : > { %984 = vmatpush.bf16.msrb.mxu3 %v1333_v22 }
  0x42   : > { %902 = vmatpush.bf16.msrb.mxu2 %v1324_v15 }
  0x43   : > { %985 = vmatpush.bf16.msrb.mxu3 %v1332_v29 }
  0x46   : > { %903 = vmatpush.bf16.msrb.mxu2 %v1323_v16 }
  0x47   : > { %986 = vmatpush.bf16.msrb.mxu3 %v1331_v30 }
  0x4a   : > { %904 = vmatpush.bf16.msrb.mxu2 %v1322_v17 }
  0x4b   : > { %987 = vmatpush.bf16.msrb.mxu3 %v1330_v31 }
  0x92   : > { %v482_v38 = vpop.f32.mrf.mxu0 }
  0x93   : > { %v495_v39 = vpop.f32.mrf.mxu1  ;;  %v483_v40 = vadd.f32 %v482_v38, %v445_v36  ;;  %v1350_v38 = vld [vmem:[%s1667_s12] ss:$0 sm:$0xff] }
  0x94   : > { %v496_v41 = vadd.f32 %v495_v39, %v446_v37 }
  0x95   : > { %1351 = vtanh.f32 %v483_v40 }
  0x96   : > { %1353 = vtanh.f32 %v496_v41 }
  0x9a   : > { %v484_v42 = vpop.f32.mrf.mxu0 }
  0x9b   : > { %v497_v43 = vpop.f32.mrf.mxu1  ;;  %v1352_v44 = vpop.eup %1351 }
  0x9c   : > { %v1354_v45 = vpop.eup %1353  ;;  %v534_v46 = vpack.c.bf16 %v1352_v44, %v1352_v44 }
  0x9d   : > { %v535_v47 = vpack.c.bf16 %v1354_v45, %v1354_v45 }
  0x9e   : > { %643 = vmatmul.bf16.vlgmr.msra.gmra.mxu2 %v534_v46 }
  0x9f   : > { %656 = vmatmul.bf16.vlgmr.msra.gmra.mxu3 %v535_v47 }
 0x121   : > { %v644_v57 = vpop.f32.mrf.mxu2 }
 0x122   : > { %v645_v58 = vadd.f32 %v1346_v56, %v644_v57  ;;  %v657_v59 = vpop.f32.mrf.mxu3 }
 0x124   : > { %v658_v60 = vadd.f32 %v657_v59, %v645_v58 }
 0x126   : > { %1355 = vtanh.f32 %v658_v60 }
 0x129   : > { %v646_v61 = vpop.f32.mrf.mxu2 }
 0x12a   : > { %v659_v62 = vpop.f32.mrf.mxu3 }
 0x12c   : > { %v1356_v63 = vpop.eup %1355 }
 0x12d   : > { %v679_v0 = vpack.c.bf16 %v1356_v63, %v1356_v63 }
 0x12f   : > { %739 = vmatmul.bf16.vlgmr.msrb.gmra.mxu0 %v679_v0 }
 0x1ac   : > { %v740_v10 = vpop.f32.mrf.mxu0 }
 0x1ad   : > { %v741_v11 = vadd.f32 %v1347_v9, %v740_v10 }
 0x1af   : > { %1357 = vtanh.f32 %v741_v11 }
 0x1b4   : > { %v742_v12 = vpop.f32.mrf.mxu0 }
 0x1b5   : > { %v1358_v13 = vpop.eup %1357 }
 0x1b6   : > { %v762_v14 = vpack.c.bf16 %v1358_v13, %v1358_v13 }
 0x1b8   : > { %822 = vmatmul.bf16.vlgmr.msrb.gmra.mxu1 %v762_v14 }
 0x235   : > { %v823_v24 = vpop.f32.mrf.mxu1 }
 0x236   : > { %v824_v25 = vadd.f32 %v1348_v23, %v823_v24 }
 0x238   : > { %1359 = vtanh.f32 %v824_v25 }
 0x23d   : > { %v825_v26 = vpop.f32.mrf.mxu1 }
 0x23e   : > { %v1360_v27 = vpop.eup %1359 }
 0x23f   : > { %v845_v28 = vpack.c.bf16 %v1360_v27, %v1360_v27 }
 0x241   : > { %905 = vmatmul.bf16.vlgmr.msrb.gmra.mxu2 %v845_v28 }
 0x2c4   : > { %v906_v33 = vpop.f32.mrf.mxu2 }
 0x2c5   : > { %v907_v34 = vadd.f32 %v1349_v32, %v906_v33 }
 0x2c7   : > { %1361 = vtanh.f32 %v907_v34 }
 0x2cc   : > { %v908_v35 = vpop.f32.mrf.mxu2 }
 0x2cd   : > { %v1362_v36 = vpop.eup %1361 }
 0x2ce   : > { %v928_v37 = vpack.c.bf16 %v1362_v36, %v1362_v36 }
 0x2d0   : > { %988 = vmatmul.bf16.vlgmr.msrb.gmra.mxu3 %v928_v37 }
 0x353   : > { %v989_v39 = vpop.f32.mrf.mxu3 }
 0x354   : > { %v990_v40 = vadd.f32 %v1350_v38, %v989_v39 }
 0x356   : > { %v1283_v41 = vmul.f32 -1.442695, %v990_v40 }
 0x358   : > { %1363 = vpow2.f32 %v1283_v41 }
 0x35b   : > { %v991_v42 = vpop.f32.mrf.mxu3 }
 0x35e   : > { %v1364_v43 = vpop.eup %1363 }
 0x35f   : > { %v996_v44 = vadd.f32 1.0, %v1364_v43 }
 0x361   : > { %1365 = vrcp.f32 %v996_v44  ;;  %v1008_v48 = vand.u32 2147483648, %v996_v44  ;;  %v1006_v50 = vand.u32 2147483647, %v996_v44  ;;  %vm1002_vm2 = vweird.f32 %v996_v44 }
 0x363   : > { %v1009_v52 = vor.u32 1.1754944e-38, %v1008_v48  ;;  %vm1007_vm4 = vcmp.eq.f32.partialorder %v1006_v50, 8.507059e+37 }
 0x367   : > { %v1366_v45 = vpop.eup %1365 }
 0x368   : > { %v998_v46 = vmul.f32 %v1366_v45, %v996_v44  ;;  %vm1003_vm1 = vweird.f32 %v1366_v45 }
 0x369   : > { %vm1004_vm3 = vmor %vm1002_vm2, %vm1003_vm1 }
 0x36a   : > { %v999_v47 = vsub.f32 1.0, %v998_v46 }
 0x36c   : > { %v1000_v49 = vmul.f32 %v1366_v45, %v999_v47 }
 0x36e   : > { %v1001_v51 = vadd.f32 %v1366_v45, %v1000_v49 }
 0x370   : > { %v1005_v53 = vsel %vm1004_vm3, %v1366_v45, %v1001_v51 }
 0x371   : > { %v1010_v54 = vsel %vm1007_vm4, %v1009_v52, %v1005_v53 }
 0x372   : > { %1012 = vst [vmem:[%s435_s29] sm:$0xff] %v1010_v54 }
 0x373 PF: > { %s23_s25 = sadd.s32 1, %s1373_s25  }
 0x374   : > { %p20_p4 = scmp.ge.s32.totalorder %s23_s25, 4  }
 0x376   :  { %22 = sbr.rel (!%p20_p4) target bundleno = 1 (0x1), region = 102 }

</bundles_post_ra>
